<compile_context>
chip_gen: v7x
topology: tpu7x:2x2x1
jax: 0.10.0
libtpu: 0.0.40
codegen_flags: <defaults>
</compile_context>

<pallas_src>
import dataclasses
import functools

import jax
import jax.numpy as jnp
from jax.experimental import pallas as pl
from jax.experimental.pallas import tpu as pltpu

LANE = 128


# ---------------------------------------------------------------------------
# Kernels
# ---------------------------------------------------------------------------
def _actor_kernel(x_ref, w1_ref, b1_ref,
                  wa_ref, ba_ref, wb_ref, bb_ref, wc_ref, bc_ref,
                  o_ref):
    """Trunk + fused (or single-head) MLP for one batch tile.

    x_ref : (bt, d_in)   bf16 state tile (streamed over the batch grid)
    w1_ref: (d_in, Hp)   bf16 trunk weight,   b1_ref: (1, Hp)  f32
    wa_ref: (Hp, Na)     bf16 head layer 1,   ba_ref: (1, Na)  f32
    wb_ref: (Na, Nb)     bf16 head layer 2,   bb_ref: (1, Nb)  f32
    wc_ref: (Nb, Nc)     bf16 head layer 3,   bc_ref: (1, Nc)  f32
    o_ref : (bt, Nc)     f32 output, torch.cat layout (+ zero lane padding)
    """
    x = x_ref[...]
    h = jnp.maximum(
        jnp.dot(x, w1_ref[...], preferred_element_type=jnp.float32)
        + b1_ref[...], 0.0).astype(jnp.bfloat16)
    a = jnp.maximum(
        jnp.dot(h, wa_ref[...], preferred_element_type=jnp.float32)
        + ba_ref[...], 0.0).astype(jnp.bfloat16)
    b = jnp.maximum(
        jnp.dot(a, wb_ref[...], preferred_element_type=jnp.float32)
        + bb_ref[...], 0.0).astype(jnp.bfloat16)
    o_ref[...] = jnp.tanh(
        jnp.dot(b, wc_ref[...], preferred_element_type=jnp.float32)
        + bc_ref[...]).astype(o_ref.dtype)


def _actor_perhead_kernel(num_heads, a_pad,
                          x_ref, w1_ref, b1_ref,
                          wh1_ref, bh1_ref, wh2_ref, bh2_ref,
                          wh3_ref, bh3_ref, o_ref):
    """Trunk once + per-head MLP loop (used when H*h4 is too big to fuse)."""
    x = x_ref[...]
    h = jnp.maximum(
        jnp.dot(x, w1_ref[...], preferred_element_type=jnp.float32)
        + b1_ref[...], 0.0).astype(jnp.bfloat16)
    for k in range(num_heads):          # static unroll; H known at trace time
        a = jnp.maximum(
            jnp.dot(h, wh1_ref[k], preferred_element_type=jnp.float32)
            + bh1_ref[k], 0.0).astype(jnp.bfloat16)
        b = jnp.maximum(
            jnp.dot(a, wh2_ref[k], preferred_element_type=jnp.float32)
            + bh2_ref[k], 0.0).astype(jnp.bfloat16)
        o_ref[:, k * a_pad:(k + 1) * a_pad] = jnp.tanh(
            jnp.dot(b, wh3_ref[k], preferred_element_type=jnp.float32)
            + bh3_ref[k]).astype(o_ref.dtype)


# ---------------------------------------------------------------------------
# Tiling / spec helpers
# ---------------------------------------------------------------------------
def _round_up(x, m):
    return ((x + m - 1) // m) * m


def _pad_to(x, rows, cols):
    pads = ([(0, 0)] * (x.ndim - 2)
            + [(0, rows - x.shape[-2]), (0, cols - x.shape[-1])])
    return jnp.pad(x, pads)


def _pick_batch_tile(B):
    if B >= 1024:
        return 512                       # 85%+ of HBM roofline, >=2 grid steps
    if B >= 512:
        return 256                       # keep >=2 steps so both v7x TCs work
    return _round_up(max(B, 8), 8)       # single sublane-aligned tile


def _vmem_cap_bytes():
    try:
        return int(pltpu.get_tpu_info().vmem_capacity_bytes)
    except Exception:
        return 64 << 20                  # v7x per-core VMEM; safe lower bound


def _vmem_limit_bytes(bt, in_cols, out_cols, inter_cols, weights_bytes):
    stream = 2 * bt * in_cols * 2 + 2 * bt * out_cols * 4   # double-buffered io
    inter = bt * inter_cols * 4                             # live h/a/b scratch
    est = 2 * weights_bytes + stream + 2 * inter + (4 << 20)
    cap = _vmem_cap_bytes()
    return int(max(16 << 20, min(est, (cap * 85) // 100)))


def _const_spec(shape):
    """Resident (grid-invariant) operand: constant index map, single-buffered."""
    index_map = lambda i: (0,) * len(shape)
    try:
        return pl.BlockSpec(shape, index_map, pipeline_mode=pl.Buffered(1))
    except (TypeError, AttributeError):  # older jax without pipeline_mode
        return pl.BlockSpec(shape, index_map)


def _run_tiled(kernel, state, weights, out_pad, inter_cols):
    """Batch-tiled pallas_call driver; `weights` are resident operands."""
    B, d_in = state.shape
    bt = _pick_batch_tile(B)
    n_tiles = (B + bt - 1) // bt
    b_pad = n_tiles * bt

    x = state.astype(jnp.bfloat16)
    if b_pad != B:
        x = jnp.pad(x, ((0, b_pad - B), (0, 0)))

    weights_bytes = sum(int(w.size) * w.dtype.itemsize for w in weights)
    vmem_limit = _vmem_limit_bytes(bt, d_in, out_pad, inter_cols, weights_bytes)

    out = pl.pallas_call(
        kernel,
        out_shape=jax.ShapeDtypeStruct((b_pad, out_pad), jnp.float32),
        grid=(n_tiles,),
        in_specs=[pl.BlockSpec((bt, d_in), lambda i: (i, 0))]
                 + [_const_spec(w.shape) for w in weights],
        out_specs=pl.BlockSpec((bt, out_pad), lambda i: (i, 0)),
        compiler_params=pltpu.CompilerParams(
            dimension_semantics=("parallel",),
            vmem_limit_bytes=vmem_limit),
    )(x, *weights)
    return out[:B]


# ---------------------------------------------------------------------------
# Parameter packing & forward
# ---------------------------------------------------------------------------
@dataclasses.dataclass(frozen=True)
class ActorDims:
    num_state_inputs: int
    num_actions: int
    hidden_size: int
    num_heads: int
    fused: bool


def _block_diag(blocks):
    H = len(blocks)
    r, c = blocks[0].shape
    out = jnp.zeros((H * r, H * c), blocks[0].dtype)
    for k, blk in enumerate(blocks):
        out = out.at[k * r:(k + 1) * r, k * c:(k + 1) * c].set(blk)
    return out


def pack_params(params, fuse_threshold=1024):
    """One-time packing: bf16 cast, 128-lane padding, optional head fusion.

    Fused (H*h4 <= fuse_threshold): layer 1 concatenated over heads, layers 2/3
    block-diagonal -> mathematically identical to per-head nets + torch.cat.
    Above the threshold the O(H^2) block-diagonal cost is avoided and stacked
    per-head weights are used (kernel loops over heads).
    """
    w1, b1 = params["w1"], params["b1"]
    wh1, bh1 = params["wh1"], params["bh1"]
    wh2, bh2 = params["wh2"], params["bh2"]
    wh3, bh3 = params["wh3"], params["bh3"]
    d_in, hidden = w1.shape
    H, _, h4 = wh1.shape
    A = wh3.shape[-1]

    hid_p = _round_up(hidden, LANE)
    h4_p = _round_up(h4, LANE)
    a_p = _round_up(A, LANE)
    bf16 = jnp.bfloat16

    packed = {
        "w1p": _pad_to(w1, d_in, hid_p).astype(bf16),
        "b1p": _pad_to(b1, 1, hid_p),
        # Stacked, padded per-head weights (single-head path & unfused path).
        "wh1p": _pad_to(wh1, hid_p, h4_p).astype(bf16),
        "bh1p": _pad_to(bh1, 1, h4_p),
        "wh2p": _pad_to(wh2, h4_p, h4_p).astype(bf16),
        "bh2p": _pad_to(bh2, 1, h4_p),
        "wh3p": _pad_to(wh3, h4_p, a_p).astype(bf16),
        "bh3p": _pad_to(bh3, 1, a_p),
    }

    fused = (H * h4) <= fuse_threshold
    if fused:
        na_p = _round_up(H * h4, LANE)
        nc_p = _round_up(H * A, LANE)
        wf1 = jnp.concatenate([wh1[k] for k in range(H)], axis=1)
        bf1 = jnp.concatenate([bh1[k] for k in range(H)], axis=1)
        wf2 = _block_diag([wh2[k] for k in range(H)])
        bf2 = jnp.concatenate([bh2[k] for k in range(H)], axis=1)
        wf3 = _block_diag([wh3[k] for k in range(H)])
        bf3 = jnp.concatenate([bh3[k] for k in range(H)], axis=1)
        packed.update(
            wf1=_pad_to(wf1, hid_p, na_p).astype(bf16), bf1=_pad_to(bf1, 1, na_p),
            wf2=_pad_to(wf2, na_p, na_p).astype(bf16),  bf2=_pad_to(bf2, 1, na_p),
            wf3=_pad_to(wf3, na_p, nc_p).astype(bf16),  bf3=_pad_to(bf3, 1, nc_p))

    return packed, ActorDims(d_in, A, hidden, H, fused)


def multi_head_actor_forward(state, packed, dims, head=-1):
    """head == -1 : [B, num_heads*num_actions] (torch.cat order); else [B, A]."""
    H, A = dims.num_heads, dims.num_actions
    if head == -1:
        if dims.fused:
            weights = (packed["w1p"], packed["b1p"],
                       packed["wf1"], packed["bf1"],
                       packed["wf2"], packed["bf2"],
                       packed["wf3"], packed["bf3"])
            inter_cols = (packed["w1p"].shape[1] + packed["wf1"].shape[1]
                          + packed["wf2"].shape[1])
            out = _run_tiled(_actor_kernel, state, weights,
                             packed["wf3"].shape[1], inter_cols)
            return out[:, :H * A]
        # Unfused: loop over heads inside the kernel over stacked weights.
        a_pad = packed["wh3p"].shape[-1]
        weights = (packed["w1p"], packed["b1p"],
                   packed["wh1p"], packed["bh1p"],
                   packed["wh2p"], packed["bh2p"],
                   packed["wh3p"], packed["bh3p"])
        inter_cols = packed["w1p"].shape[1] + 2 * packed["wh1p"].shape[-1]
        kernel = functools.partial(_actor_perhead_kernel, H, a_pad)
        out = _run_tiled(kernel, state, weights, H * a_pad, inter_cols)
        B = state.shape[0]
        return out.reshape(B, H, a_pad)[:, :, :A].reshape(B, H * A)
    elif 0 <= head < H:
        weights = (packed["w1p"], packed["b1p"],
                   packed["wh1p"][head], packed["bh1p"][head],
                   packed["wh2p"][head], packed["bh2p"][head],
                   packed["wh3p"][head], packed["bh3p"][head])
        inter_cols = packed["w1p"].shape[1] + 2 * packed["wh1p"].shape[-1]
        out = _run_tiled(_actor_kernel, state, weights,
                         packed["wh3p"].shape[-1], inter_cols)
        return out[:, :A]
    else:
        raise IndexError(f"Head index {head} is out of range for {H} heads.")


# ---------------------------------------------------------------------------
# Init & references
# ---------------------------------------------------------------------------
def init_params(key, num_state_inputs, num_actions, hidden_size, num_heads):
    """Mirrors MultiHeadActor.reset_parameters(): U(-0.2,0.2) weights
    (U(-0.02,0.02) for the last per-head layer), zero biases. Weights stored
    as [in, out] (transposed vs nn.Linear), distributionally identical."""
    h4 = hidden_size // 4
    ks = jax.random.split(key, 4)
    u = lambda k, shape, lim: jax.random.uniform(
        k, shape, dtype=jnp.float32, minval=-lim, maxval=lim)
    return {
        "w1": u(ks[0], (num_state_inputs, hidden_size), 0.2),
        "b1": jnp.zeros((1, hidden_size), jnp.float32),
        "wh1": u(ks[1], (num_heads, hidden_size, h4), 0.2),
        "bh1": jnp.zeros((num_heads, 1, h4), jnp.float32),
        "wh2": u(ks[2], (num_heads, h4, h4), 0.2),
        "bh2": jnp.zeros((num_heads, 1, h4), jnp.float32),
        "wh3": u(ks[3], (num_heads, h4, num_actions), 0.02),
        "bh3": jnp.zeros((num_heads, 1, num_actions), jnp.float32),
    }
    # TODO(synk): mutate() (in-place parameter noise) is a host-side parameter
    # update, not part of the forward pass, so it is not implemented as a kernel.


def _reference_forward(state, params, head=-1, bf16=False):
    """Pure-JAX reference. bf16=True emulates the kernel's dtype path
    (bf16 operands, f32 accumulation); bf16=False is exact f32 semantics."""
    cast = (lambda a: a.astype(jnp.bfloat16)) if bf16 else (lambda a: a)
    dot = lambda a, b: jnp.dot(cast(a), cast(b),
                               preferred_element_type=jnp.float32)
    x = jnp.maximum(dot(state, params["w1"]) + params["b1"], 0.0)
    outs = []
    for k in range(params["wh1"].shape[0]):
        a = jnp.maximum(dot(x, params["wh1"][k]) + params["bh1"][k], 0.0)
        b = jnp.maximum(dot(a, params["wh2"][k]) + params["bh2"][k], 0.0)
        outs.append(jnp.tanh(dot(b, params["wh3"][k]) + params["bh3"][k]))
    return jnp.concatenate(outs, axis=1) if head == -1 else outs[head]


# ---------------------------------------------------------------------------
# Demo / correctness check
# ---------------------------------------------------------------------------
if __name__ == "__main__":
    batch = 8
    num_state_inputs = 32
    hidden_size = 32          # hidden_size // 4 == 8
    num_actions = 4
    num_heads = 3

    key = jax.random.PRNGKey(0)
    k_params, k_state = jax.random.split(key)
    params = init_params(k_params, num_state_inputs, num_actions,
                         hidden_size, num_heads)
    state = jax.random.normal(k_state, (batch, num_state_inputs),
                              dtype=jnp.float32)

    packed, dims = pack_params(params)
    packed = jax.tree_util.tree_map(jax.block_until_ready, packed)

    ref_bf16 = _reference_forward(state, params, head=-1, bf16=True)
    ref_f32 = _reference_forward(state, params, head=-1, bf16=False)

    # All heads — fused block-diagonal path, torch.cat layout [B, H*A].
    fwd_all = jax.jit(functools.partial(multi_head_actor_forward,
                                        dims=dims, head=-1))
    out = jax.block_until_ready(fwd_all(state, packed))
    assert out.shape == (batch, num_heads * num_actions), out.shape
    assert jnp.allclose(out, ref_bf16, atol=2e-3), "mismatch vs bf16 reference"
    assert jnp.allclose(out, ref_f32, atol=5e-2), "mismatch vs f32 reference"

    # Single head (head=1) — same kernel, only that head's padded weights.
    fwd_h1 = jax.jit(functools.partial(multi_head_actor_forward,
                                       dims=dims, head=1))
    out_h1 = jax.block_until_ready(fwd_h1(state, packed))
    assert out_h1.shape == (batch, num_actions), out_h1.shape
    assert jnp.allclose(out_h1, _reference_forward(state, params, head=1,
                                                   bf16=True),
                        atol=2e-3), "mismatch vs reference (head=1)"

    # Unfused path (used automatically when H*h4 > fuse_threshold).
    packed_ph, dims_ph = pack_params(params, fuse_threshold=0)
    fwd_ph = jax.jit(functools.partial(multi_head_actor_forward,
                                       dims=dims_ph, head=-1))
    out_ph = jax.block_until_ready(fwd_ph(state, packed_ph))
    assert out_ph.shape == (batch, num_heads * num_actions), out_ph.shape
    assert jnp.allclose(out_ph, ref_bf16, atol=2e-3), "mismatch (unfused path)"

    print("KERNEL_OK")
</pallas_src>

<mosaic_0001>
module attributes {stable_mosaic.version = 11 : i64} {
  func.func @_actor_kernel(%arg0: i32, %arg1: memref<8x32xbf16, #tpu.memory_space<vmem>>, %arg2: memref<32x128xbf16, #tpu.memory_space<vmem>>, %arg3: memref<1x128xf32, #tpu.memory_space<vmem>>, %arg4: memref<128x128xbf16, #tpu.memory_space<vmem>>, %arg5: memref<1x128xf32, #tpu.memory_space<vmem>>, %arg6: memref<128x128xbf16, #tpu.memory_space<vmem>>, %arg7: memref<1x128xf32, #tpu.memory_space<vmem>>, %arg8: memref<128x128xbf16, #tpu.memory_space<vmem>>, %arg9: memref<1x128xf32, #tpu.memory_space<vmem>>, %arg10: memref<8x128xf32, #tpu.memory_space<vmem>>) attributes {dimension_semantics = [#tpu.dimension_semantics<parallel>], iteration_bounds = array<i64: 1>, scalar_prefetch = 0 : i64, scratch_operands = 0 : i64, tpu.core_type = #tpu.core_type<tc>, window_params = [{transform_indices = @transform_0, window_bounds = array<i64: 8, 32>}, {pipeline_mode = #tpu.pipeline_mode<synchronous>, transform_indices = @transform_1, window_bounds = array<i64: 32, 128>}, {pipeline_mode = #tpu.pipeline_mode<synchronous>, transform_indices = @transform_2, window_bounds = array<i64: 1, 128>}, {pipeline_mode = #tpu.pipeline_mode<synchronous>, transform_indices = @transform_3, window_bounds = array<i64: 128, 128>}, {pipeline_mode = #tpu.pipeline_mode<synchronous>, transform_indices = @transform_4, window_bounds = array<i64: 1, 128>}, {pipeline_mode = #tpu.pipeline_mode<synchronous>, transform_indices = @transform_5, window_bounds = array<i64: 128, 128>}, {pipeline_mode = #tpu.pipeline_mode<synchronous>, transform_indices = @transform_6, window_bounds = array<i64: 1, 128>}, {pipeline_mode = #tpu.pipeline_mode<synchronous>, transform_indices = @transform_7, window_bounds = array<i64: 128, 128>}, {pipeline_mode = #tpu.pipeline_mode<synchronous>, transform_indices = @transform_8, window_bounds = array<i64: 1, 128>}, {transform_indices = @transform_9, window_bounds = array<i64: 8, 128>}]} {
    %c0 = arith.constant 0 : index
    %c0_0 = arith.constant 0 : index
    %0 = vector.load %arg1[%c0, %c0_0] : memref<8x32xbf16, #tpu.memory_space<vmem>>, vector<8x32xbf16>
    %c0_1 = arith.constant 0 : index
    %c0_2 = arith.constant 0 : index
    %1 = vector.load %arg2[%c0_1, %c0_2] : memref<32x128xbf16, #tpu.memory_space<vmem>>, vector<32x128xbf16>
    %cst = arith.constant dense<0.000000e+00> : vector<8x128xf32>
    %2 = tpu.matmul %0, %1, %cst {dimension_numbers = #tpu.dot_dimension_numbers<[1], [0], [0], [1], [0, 0, 1, 1], [], []>} : vector<8x32xbf16>, vector<32x128xbf16>, vector<8x128xf32> -> vector<8x128xf32>
    %c0_3 = arith.constant 0 : index
    %c0_4 = arith.constant 0 : index
    %3 = vector.load %arg3[%c0_3, %c0_4] : memref<1x128xf32, #tpu.memory_space<vmem>>, vector<1x128xf32>
    %4 = vector.broadcast %3 : vector<1x128xf32> to vector<8x128xf32>
    %5 = arith.addf %2, %4 : vector<8x128xf32>
    %cst_5 = arith.constant 0.000000e+00 : f32
    %6 = vector.broadcast %cst_5 : f32 to vector<8x128xf32>
    %7 = arith.maximumf %5, %6 : vector<8x128xf32>
    %8 = arith.truncf %7 : vector<8x128xf32> to vector<8x128xbf16>
    %c0_6 = arith.constant 0 : index
    %c0_7 = arith.constant 0 : index
    %9 = vector.load %arg4[%c0_6, %c0_7] : memref<128x128xbf16, #tpu.memory_space<vmem>>, vector<128x128xbf16>
    %cst_8 = arith.constant dense<0.000000e+00> : vector<8x128xf32>
    %10 = tpu.matmul %8, %9, %cst_8 {dimension_numbers = #tpu.dot_dimension_numbers<[1], [0], [0], [1], [0, 0, 1, 1], [], []>} : vector<8x128xbf16>, vector<128x128xbf16>, vector<8x128xf32> -> vector<8x128xf32>
    %c0_9 = arith.constant 0 : index
    %c0_10 = arith.constant 0 : index
    %11 = vector.load %arg5[%c0_9, %c0_10] : memref<1x128xf32, #tpu.memory_space<vmem>>, vector<1x128xf32>
    %12 = vector.broadcast %11 : vector<1x128xf32> to vector<8x128xf32>
    %13 = arith.addf %10, %12 : vector<8x128xf32>
    %cst_11 = arith.constant 0.000000e+00 : f32
    %14 = vector.broadcast %cst_11 : f32 to vector<8x128xf32>
    %15 = arith.maximumf %13, %14 : vector<8x128xf32>
    %16 = arith.truncf %15 : vector<8x128xf32> to vector<8x128xbf16>
    %c0_12 = arith.constant 0 : index
    %c0_13 = arith.constant 0 : index
    %17 = vector.load %arg6[%c0_12, %c0_13] : memref<128x128xbf16, #tpu.memory_space<vmem>>, vector<128x128xbf16>
    %cst_14 = arith.constant dense<0.000000e+00> : vector<8x128xf32>
    %18 = tpu.matmul %16, %17, %cst_14 {dimension_numbers = #tpu.dot_dimension_numbers<[1], [0], [0], [1], [0, 0, 1, 1], [], []>} : vector<8x128xbf16>, vector<128x128xbf16>, vector<8x128xf32> -> vector<8x128xf32>
    %c0_15 = arith.constant 0 : index
    %c0_16 = arith.constant 0 : index
    %19 = vector.load %arg7[%c0_15, %c0_16] : memref<1x128xf32, #tpu.memory_space<vmem>>, vector<1x128xf32>
    %20 = vector.broadcast %19 : vector<1x128xf32> to vector<8x128xf32>
    %21 = arith.addf %18, %20 : vector<8x128xf32>
    %cst_17 = arith.constant 0.000000e+00 : f32
    %22 = vector.broadcast %cst_17 : f32 to vector<8x128xf32>
    %23 = arith.maximumf %21, %22 : vector<8x128xf32>
    %24 = arith.truncf %23 : vector<8x128xf32> to vector<8x128xbf16>
    %c0_18 = arith.constant 0 : index
    %c0_19 = arith.constant 0 : index
    %25 = vector.load %arg8[%c0_18, %c0_19] : memref<128x128xbf16, #tpu.memory_space<vmem>>, vector<128x128xbf16>
    %cst_20 = arith.constant dense<0.000000e+00> : vector<8x128xf32>
    %26 = tpu.matmul %24, %25, %cst_20 {dimension_numbers = #tpu.dot_dimension_numbers<[1], [0], [0], [1], [0, 0, 1, 1], [], []>} : vector<8x128xbf16>, vector<128x128xbf16>, vector<8x128xf32> -> vector<8x128xf32>
    %c0_21 = arith.constant 0 : index
    %c0_22 = arith.constant 0 : index
    %27 = vector.load %arg9[%c0_21, %c0_22] : memref<1x128xf32, #tpu.memory_space<vmem>>, vector<1x128xf32>
    %28 = vector.broadcast %27 : vector<1x128xf32> to vector<8x128xf32>
    %29 = arith.addf %26, %28 : vector<8x128xf32>
    %30 = math.tanh %29 : vector<8x128xf32>
    %c0_23 = arith.constant 0 : index
    %c0_24 = arith.constant 0 : index
    %31 = vector.load %arg10[%c0_23, %c0_24] : memref<8x128xf32, #tpu.memory_space<vmem>>, vector<8x128xf32>
    tpu.vector_store %arg10[%c0_23, %c0_24], %30 {strides = array<i32>} : memref<8x128xf32, #tpu.memory_space<vmem>>, vector<8x128xf32>,
    return
  }
  func.func @transform_0(%arg0: i32) -> (i32, i32) {
    %c0_i32 = arith.constant 0 : i32
    %c0_i32_0 = arith.constant 0 : i32
    return %arg0, %c0_i32 : i32, i32
  }
  func.func @transform_1(%arg0: i32) -> (i32, i32) {
    %c0_i32 = arith.constant 0 : i32
    %c0_i32_0 = arith.constant 0 : i32
    %c0_i32_1 = arith.constant 0 : i32
    return %c0_i32, %c0_i32_0 : i32, i32
  }
  func.func @transform_2(%arg0: i32) -> (i32, i32) {
    %c0_i32 = arith.constant 0 : i32
    %c0_i32_0 = arith.constant 0 : i32
    %c0_i32_1 = arith.constant 0 : i32
    return %c0_i32, %c0_i32_0 : i32, i32
  }
  func.func @transform_3(%arg0: i32) -> (i32, i32) {
    %c0_i32 = arith.constant 0 : i32
    %c0_i32_0 = arith.constant 0 : i32
    %c0_i32_1 = arith.constant 0 : i32
    return %c0_i32, %c0_i32_0 : i32, i32
  }
  func.func @transform_4(%arg0: i32) -> (i32, i32) {
    %c0_i32 = arith.constant 0 : i32
    %c0_i32_0 = arith.constant 0 : i32
    %c0_i32_1 = arith.constant 0 : i32
    return %c0_i32, %c0_i32_0 : i32, i32
  }
  func.func @transform_5(%arg0: i32) -> (i32, i32) {
    %c0_i32 = arith.constant 0 : i32
    %c0_i32_0 = arith.constant 0 : i32
    %c0_i32_1 = arith.constant 0 : i32
    return %c0_i32, %c0_i32_0 : i32, i32
  }
  func.func @transform_6(%arg0: i32) -> (i32, i32) {
    %c0_i32 = arith.constant 0 : i32
    %c0_i32_0 = arith.constant 0 : i32
    %c0_i32_1 = arith.constant 0 : i32
    return %c0_i32, %c0_i32_0 : i32, i32
  }
  func.func @transform_7(%arg0: i32) -> (i32, i32) {
    %c0_i32 = arith.constant 0 : i32
    %c0_i32_0 = arith.constant 0 : i32
    %c0_i32_1 = arith.constant 0 : i32
    return %c0_i32, %c0_i32_0 : i32, i32
  }
  func.func @transform_8(%arg0: i32) -> (i32, i32) {
    %c0_i32 = arith.constant 0 : i32
    %c0_i32_0 = arith.constant 0 : i32
    %c0_i32_1 = arith.constant 0 : i32
    return %c0_i32, %c0_i32_0 : i32, i32
  }
  func.func @transform_9(%arg0: i32) -> (i32, i32) {
    %c0_i32 = arith.constant 0 : i32
    %c0_i32_0 = arith.constant 0 : i32
    return %arg0, %c0_i32 : i32, i32
  }
}

</mosaic_0001>

<bundles_post_ra>
// kernel: multi_head_actor_forward.1
= control target key start
LH: loop header
LB: loop body
LE: loop exit
PB: predicated region body
PF: predicated region fallthrough
CT: control target
= control target key end

     0   :  { %14 = vsyncpa [#allocation3], 0  ;;  %s936_s0 = inlined_call_operand.vmem [shape: bf16[8,32], index: 0, kind: input, shape index: {}]   ;;  %s937_s1 = inlined_call_operand.vmem [shape: bf16[32,128], index: 1, kind: input, shape index: {}]   ;;  %s938_s2 = inlined_call_operand.vmem [shape: f32[1,128], index: 2, kind: input, shape index: {}]   ;;  %s939_s3 = inlined_call_operand.hbm [shape: bf16[128,128], index: 3, kind: input, shape index: {}]   ;;  %s940_s4 = inlined_call_operand.vmem [shape: f32[1,128], index: 4, kind: input, shape index: {}]   ;;  %s941_s5 = inlined_call_operand.hbm [shape: bf16[128,128], index: 5, kind: input, shape index: {}]   ;;  %s942_s6 = inlined_call_operand.vmem [shape: f32[1,128], index: 6, kind: input, shape index: {}]   ;;  %s943_s7 = inlined_call_operand.hbm [shape: bf16[128,128], index: 7, kind: input, shape index: {}]   ;;  %s944_s8 = inlined_call_operand.vmem [shape: f32[1,128], index: 8, kind: input, shape index: {}]   ;;  %s945_s9 = inlined_call_operand.hbm [shape: f32[8,128], index: 9, kind: output, shape index: {}]  }
   0x1   :  { %15 = vsyncpa [#allocation6], 0 }
   0x2   :  { %16 = vsyncpa [#allocation4], 0  ;;  %s759_s30 = smov [#allocation5]   ;;  %s760_s11 = smov [#allocation2]  }
   0x3   :  { %s42_s10 = sshll.u32 %s759_s30, 4  ;;  %s28_s12 = sshll.u32 %s760_s11, 4  ;;  %s43_s10 = int_to_ptr.vmem [resolvable:$true] %s42_s10  ;;  %s817_s12 = int_to_ptr.vmem [resolvable:$true] %s28_s12 }
   0x4   :  { %s665_s15 = scalar_lea.hbm %s941_s5, 1024 }
   0x5   :  { %p666_p0 = scmp.ne.s32.totalorder %s941_s5, %s665_s15  ;;  %p669_p1 = scmp.lt.u32.totalorder %s665_s15, %s941_s5 }
   0x7   :  { %p671_p2 = pnand %p669_p1, %p666_p0 }
   0x9   :  { %674 = shalt.err (!%p671_p2)
}
   0xa   :  { %s675_s20 = scalar_lea.vmem %s43_s10, 1024  ;;  %p680_p4 = scmp.lt.s32.totalorder %s43_s10, %s43_s10 }
   0xb   :  { %p676_p3 = scmp.ne.s32.totalorder %s43_s10, %s675_s20  ;;  %p681_p5 = scmp.lt.s32.totalorder %s675_s20, %s675_s20 }
   0xd   :  { %p682_p6 = por %p681_p5, %p680_p4 }
   0xf   :  { %p683_p7 = pnand %p682_p6, %p676_p3 }
  0x11   :  { %686 = shalt.err (!%p683_p7)
}
  0x12   :  { %s761_s21 = smov 64   ;;  %s762_s22 = smov 4  }
  0x13   :  { %48 = dma.hbm_to_vmem [thread:$0]  %s941_s5, 1024, %s43_s10, [#allocation6], %s761_s21, %s761_s21, %s762_s22  }
  0x14   :  { %s687_s27 = scalar_lea.hbm %s939_s3, 1024 }
  0x15   :  { %p688_p8 = scmp.ne.s32.totalorder %s939_s3, %s687_s27  ;;  %p691_p9 = scmp.lt.u32.totalorder %s687_s27, %s939_s3 }
  0x17   :  { %p693_p10 = pnand %p691_p9, %p688_p8 }
  0x19   :  { %696 = shalt.err (!%p693_p10)
}
  0x1a   :  { %s697_s13 = scalar_lea.vmem %s817_s12, 1024  ;;  %p702_p12 = scmp.lt.s32.totalorder %s817_s12, %s817_s12 }
  0x1b   :  { %p698_p11 = scmp.ne.s32.totalorder %s817_s12, %s697_s13  ;;  %p703_p13 = scmp.lt.s32.totalorder %s697_s13, %s697_s13 }
  0x1d   :  { %p704_p0 = por %p703_p13, %p702_p12 }
  0x1f   :  { %p705_p1 = pnand %p704_p0, %p698_p11 }
  0x21   :  { %708 = shalt.err (!%p705_p1)
}
  0x22   :  { %34 = dma.hbm_to_vmem [thread:$0]  %s939_s3, 1024, %s817_s12, [#allocation3], %s761_s21, %s761_s21, %s762_s22  }
  0x23   :  { %s763_s14 = smov [#allocation7]   ;;  %s709_s18 = scalar_lea.hbm %s943_s7, 1024 }
  0x24   :  { %s56_s15 = sshll.u32 %s763_s14, 4  ;;  %p710_p2 = scmp.ne.s32.totalorder %s943_s7, %s709_s18  ;;  %s57_s15 = int_to_ptr.vmem [resolvable:$true] %s56_s15 }
  0x25   :  { %p713_p3 = scmp.lt.u32.totalorder %s709_s18, %s943_s7 }
  0x27   :  { %p715_p4 = pnand %p713_p3, %p710_p2 }
  0x29   :  { %718 = shalt.err (!%p715_p4)
}
  0x2a   :  { %s719_s25 = scalar_lea.vmem %s57_s15, 1024  ;;  %p724_p6 = scmp.lt.s32.totalorder %s57_s15, %s57_s15 }
  0x2b   :  { %p720_p5 = scmp.ne.s32.totalorder %s57_s15, %s719_s25  ;;  %p725_p7 = scmp.lt.s32.totalorder %s719_s25, %s719_s25 }
  0x2d   :  { %p726_p8 = por %p725_p7, %p724_p6 }
  0x2f   :  { %p727_p9 = pnand %p726_p8, %p720_p5 }
  0x31   :  { %730 = shalt.err (!%p727_p9)
}
  0x32   :  { %62 = dma.hbm_to_vmem [thread:$0]  %s943_s7, 1024, %s57_s15, [#allocation6], %s761_s21, %s761_s21, %s762_s22  }
  0x33   :  { %753 = dma.done.wait [#allocation3], 1024  }
  0x34   :  { %754 = vsyncadd [#allocation3], 4294966272 }
  0x35   :  { %755 = dma.done.wait [#allocation6], 2048  }
  0x36   :  { %756 = vsyncadd [#allocation6], 4294965248  ;;  %v764_v0 = vmov 0.0   ;;  %vm765_vm0 = vmmov 0   ;;  %v637_v1 = vld [vmem:[%s937_s1] sm:$0xff]   ;;  %v638_v2 = vld [vmem:[%s937_s1 + $0x8] sm:$0xff]  }
  0x37   :  { %561 = vmatprep.subr.bf16.mxu0 %v764_v0  ;;  %565 = vmatprep.mubr.msk.bf16.mxu0 %vm765_vm0, %v764_v0  ;;  %v639_v3 = vld [vmem:[#allocation2] sm:$0xff]   ;;  %vm99_vm1 = vcmask 261120   ;;  %v640_v4 = vld [vmem:[#allocation2 + $0x8] sm:$0xff]   ;;  %v75_v5 = vld [vmem:[%s936_s0] sm:$0xf]  ;;  %s766_s5 = smov [#allocation8]  }
  0x38   :  { %569 = vmatprep.subr.bf16.mxu1 %v764_v0  ;;  %585 = vmatprep.mubr.msk.bf16.mxu1 %vm765_vm0, %v764_v0  ;;  %v641_v6 = vld [vmem:[#allocation2 + $0x10] sm:$0xff]   ;;  %v642_v7 = vld [vmem:[#allocation2 + $0x18] sm:$0xff]   ;;  %v643_v8 = vld [vmem:[#allocation2 + $0x20] sm:$0xff]  }
  0x39   :  { %562 = vmatpush3.bf16.msra.mxu0 %v637_v1  ;;  %570 = vmatpush3.bf16.msra.mxu1 %v639_v3  ;;  %v644_v9 = vld [vmem:[#allocation2 + $0x28] sm:$0xff]   ;;  %v645_v10 = vld [vmem:[#allocation2 + $0x30] sm:$0xff]   ;;  %v646_v11 = vld [vmem:[#allocation2 + $0x38] sm:$0xff]  }
  0x3a   :  { %563 = vmatprep.subr.bf16.mxu0 %v764_v0  ;;  %571 = vmatprep.subr.bf16.mxu1 %v764_v0  ;;  %v647_v12 = vld [vmem:[#allocation5] sm:$0xff]   ;;  %v648_v13 = vld [vmem:[#allocation5 + $0x8] sm:$0xff]   ;;  %v649_v14 = vld [vmem:[#allocation5 + $0x10] sm:$0xff]  }
  0x3b   :  { %v650_v15 = vld [vmem:[#allocation5 + $0x18] sm:$0xff]   ;;  %v651_v16 = vld [vmem:[#allocation5 + $0x20] sm:$0xff]   ;;  %v652_v17 = vld [vmem:[#allocation5 + $0x28] sm:$0xff]  }
  0x3c   :  { %v500_v18 = vld [vmem:[%s938_s2] ss:$0 sm:$0xff]  ;;  %v654_v27 = vld [vmem:[#allocation5 + $0x38] sm:$0xff]   ;;  %v655_v28 = vld [vmem:[#allocation7] sm:$0xff]  }
  0x3d   :  { %564 = vmatpush3.bf16.msra.mxu0 %v638_v2  ;;  %572 = vmatpush3.bf16.msra.mxu1 %v640_v4  ;;  %v653_v26 = vld [vmem:[#allocation5 + $0x30] sm:$0xff]   ;;  %v656_v29 = vld [vmem:[#allocation7 + $0x8] sm:$0xff]   ;;  %v658_v31 = vld [vmem:[#allocation7 + $0x18] sm:$0xff]  }
  0x3e   :  { %589 = vmatprep.subr.bf16.mxu0 %v764_v0  ;;  %573 = vmatprep.subr.bf16.mxu1 %v764_v0  ;;  %v657_v30 = vld [vmem:[#allocation7 + $0x10] sm:$0xff]   ;;  %v659_v32 = vld [vmem:[#allocation7 + $0x20] sm:$0xff]   ;;  %v660_v33 = vld [vmem:[#allocation7 + $0x28] sm:$0xff]  }
  0x3f   :  { %v504_v34 = vld [vmem:[%s940_s4] ss:$0 sm:$0xff]  ;;  %v662_v43 = vld [vmem:[#allocation7 + $0x38] sm:$0xff]  }
  0x40   :  { %566 = vmatmul.mubr.msk.bf16.vlgmr.msra.gmra.mrb[0].mxu0 %vm99_vm1, %v75_v5  ;;  %v661_v42 = vld [vmem:[#allocation7 + $0x30] sm:$0xff]  }
  0x41   :  { %605 = vmatprep.mubr.msk.bf16.mxu0 %vm765_vm0, %v764_v0  ;;  %574 = vmatpush3.bf16.msra.mxu1 %v641_v6  ;;  %v513_v44 = vld [vmem:[%s942_s6] ss:$0 sm:$0xff]  ;;  %s490_s6 = sshll.u32 %s766_s5, 4  ;;  %s491_s6 = int_to_ptr.vmem [resolvable:$true] %s490_s6 }
  0x42   :  { %575 = vmatprep.subr.bf16.mxu1 %v764_v0  ;;  %590 = vmatpush3.bf16.msra.mxu0 %v647_v12  ;;  %v522_v52 = vld [vmem:[%s944_s8] ss:$0 sm:$0xff]  ;;  %s731_s10 = scalar_lea.vmem %s491_s6, 128  ;;  %p736_p11 = scmp.lt.s32.totalorder %s491_s6, %s491_s6 }
  0x43   :  { %591 = vmatprep.subr.bf16.mxu0 %v764_v0  ;;  %p732_p10 = scmp.ne.s32.totalorder %s491_s6, %s731_s10  ;;  %p737_p12 = scmp.lt.s32.totalorder %s731_s10, %s731_s10 }
  0x45   :  { %576 = vmatpush3.bf16.msra.mxu1 %v642_v7  ;;  %p738_p13 = por %p737_p12, %p736_p11 }
  0x46   :  { %577 = vmatprep.subr.bf16.mxu1 %v764_v0  ;;  %592 = vmatpush3.bf16.msra.mxu0 %v648_v13 }
  0x47   :  { %593 = vmatprep.subr.bf16.mxu0 %v764_v0  ;;  %p739_p0 = pnand %p738_p13, %p732_p10 }
  0x49   :  { %578 = vmatpush3.bf16.msra.mxu1 %v643_v8 }
  0x4a   :  { %579 = vmatprep.subr.bf16.mxu1 %v764_v0  ;;  %594 = vmatpush3.bf16.msra.mxu0 %v649_v14 }
  0x4b   :  { %595 = vmatprep.subr.bf16.mxu0 %v764_v0 }
  0x4d   :  { %580 = vmatpush3.bf16.msra.mxu1 %v644_v9 }
  0x4e   :  { %581 = vmatprep.subr.bf16.mxu1 %v764_v0  ;;  %596 = vmatpush3.bf16.msra.mxu0 %v650_v15 }
  0x4f   :  { %597 = vmatprep.subr.bf16.mxu0 %v764_v0 }
  0x51   :  { %582 = vmatpush3.bf16.msra.mxu1 %v645_v10 }
  0x52   :  { %583 = vmatprep.subr.bf16.mxu1 %v764_v0  ;;  %598 = vmatpush3.bf16.msra.mxu0 %v651_v16 }
  0x53   :  { %599 = vmatprep.subr.bf16.mxu0 %v764_v0 }
  0x55   :  { %584 = vmatpush3.bf16.msra.mxu1 %v646_v11 }
  0x56   :  { %609 = vmatprep.subr.bf16.mxu1 %v764_v0  ;;  %600 = vmatpush3.bf16.msra.mxu0 %v652_v17 }
  0x57   :  { %601 = vmatprep.subr.bf16.mxu0 %v764_v0 }
  0x5a   :  { %602 = vmatpush3.bf16.msra.mxu0 %v653_v26 }
  0x5b   :  { %603 = vmatprep.subr.bf16.mxu0 %v764_v0 }
  0x5e   :  { %604 = vmatpush3.bf16.msra.mxu0 %v654_v27 }
 0x113   :  { %v137_v19 = vpop.f32.mrb[0].mxu0 }
 0x114   :  { %v138_v20 = vadd.f32 %v500_v18, %v137_v19  ;;  %v567_v21 = vpop.f32.mrb[1].mxu0 }
 0x115   :  { %v140_v22 = vpop.f32.mrb[2].mxu0 }
 0x116   :  { %v143_v23 = vmax.f32 %v138_v20, 0.0  ;;  %v568_v24 = vpop.f32.mrb[3].mxu0 }
 0x118   :  { %v144_v25 = vpack.c.bf16 %v143_v23, %v143_v23 }
 0x11a   :  { %586 = vmatmul.mubr.bf16.vlgmr.msra.gmra.mrb[0].mxu1 %v144_v25 }
 0x11b   :  { %625 = vmatprep.mubr.msk.bf16.mxu1 %vm765_vm0, %v764_v0  ;;  %610 = vmatpush3.bf16.msra.mxu1 %v655_v28 }
 0x11c   :  { %611 = vmatprep.subr.bf16.mxu1 %v764_v0 }
 0x11f   :  { %612 = vmatpush3.bf16.msra.mxu1 %v656_v29 }
 0x120   :  { %613 = vmatprep.subr.bf16.mxu1 %v764_v0 }
 0x123   :  { %614 = vmatpush3.bf16.msra.mxu1 %v657_v30 }
 0x124   :  { %615 = vmatprep.subr.bf16.mxu1 %v764_v0 }
 0x127   :  { %616 = vmatpush3.bf16.msra.mxu1 %v658_v31 }
 0x128   :  { %617 = vmatprep.subr.bf16.mxu1 %v764_v0 }
 0x12b   :  { %618 = vmatpush3.bf16.msra.mxu1 %v659_v32 }
 0x12c   :  { %619 = vmatprep.subr.bf16.mxu1 %v764_v0 }
 0x12f   :  { %620 = vmatpush3.bf16.msra.mxu1 %v660_v33 }
 0x130   :  { %621 = vmatprep.subr.bf16.mxu1 %v764_v0 }
 0x133   :  { %622 = vmatpush3.bf16.msra.mxu1 %v661_v42 }
 0x134   :  { %623 = vmatprep.subr.bf16.mxu1 %v764_v0 }
 0x137   :  { %624 = vmatpush3.bf16.msra.mxu1 %v662_v43 }
 0x1ed   :  { %v250_v35 = vpop.f32.mrb[0].mxu1 }
 0x1ee   :  { %v251_v36 = vadd.f32 %v504_v34, %v250_v35  ;;  %v587_v37 = vpop.f32.mrb[1].mxu1 }
 0x1ef   :  { %v253_v38 = vpop.f32.mrb[2].mxu1 }
 0x1f0   :  { %v256_v39 = vmax.f32 %v251_v36, 0.0  ;;  %v588_v40 = vpop.f32.mrb[3].mxu1 }
 0x1f2   :  { %v257_v41 = vpack.c.bf16 %v256_v39, %v256_v39 }
 0x1f4   :  { %606 = vmatmul.mubr.bf16.vlgmr.msra.gmra.mrb[4].mxu0 %v257_v41 }
 0x2c7   :  { %v363_v45 = vpop.f32.mrb[4].mxu0 }
 0x2c8   :  { %v364_v46 = vadd.f32 %v513_v44, %v363_v45  ;;  %v607_v47 = vpop.f32.mrb[5].mxu0 }
 0x2c9   :  { %v366_v48 = vpop.f32.mrb[6].mxu0 }
 0x2ca   :  { %v369_v49 = vmax.f32 %v364_v46, 0.0  ;;  %v608_v50 = vpop.f32.mrb[7].mxu0 }
 0x2cc   :  { %v370_v51 = vpack.c.bf16 %v369_v49, %v369_v49 }
 0x2ce   :  { %626 = vmatmul.mubr.bf16.vlgmr.msra.gmra.mrb[4].mxu1 %v370_v51 }
 0x3a1   :  { %v476_v53 = vpop.f32.mrb[4].mxu1 }
 0x3a2   :  { %v477_v54 = vadd.f32 %v522_v52, %v476_v53  ;;  %v627_v55 = vpop.f32.mrb[5].mxu1 }
 0x3a3   :  { %v479_v56 = vpop.f32.mrb[6].mxu1 }
 0x3a4   :  { %663 = vtanh.f32 %v477_v54  ;;  %v628_v57 = vpop.f32.mrb[7].mxu1 }
 0x3ae   :  { %v664_v58 = vpop.eup %663 }
 0x3af   :  { %483 = vst [vmem:[#allocation8] sm:$0xff] %v664_v58 }
 0x3b0   :  { %742 = shalt.err (!%p739_p0)
}
 0x3b1   :  { %s743_s15 = scalar_lea.hbm %s945_s9, 128 }
 0x3b2   :  { %p744_p1 = scmp.ne.s32.totalorder %s945_s9, %s743_s15  ;;  %p747_p2 = scmp.lt.u32.totalorder %s743_s15, %s945_s9 }
 0x3b4   :  { %p749_p3 = pnand %p747_p2, %p744_p1 }
 0x3b6   :  { %752 = shalt.err (!%p749_p3)
}
 0x3b7   :  { %493 = dma.vmem_to_hbm [thread:$0]  %s491_s6, 128, %s945_s9, [#allocation4]  }
 0x3b8   :  { %757 = dma.done.wait [#allocation4], 128  }
 0x3b9   :  { %758 = vsyncadd [#allocation4], 4294967168 }
 0x3ba   :  { %497 = vsyncpa [#allocation3], 1 }
 0x3bb   :  { %498 = vsyncpa [#allocation6], 1 }
 0x3bc   :  { %499 = vsyncpa [#allocation4], 1 }

</bundles_post_ra>
